<compile_context>
chip_gen: v6e
topology: v6e:2x2x1
jax: 0.10.0
libtpu: 0.0.40
codegen_flags: <defaults>
</compile_context>

<pallas_src>
import jax
import jax.numpy as jnp
from jax import lax
from jax.experimental import pallas as pl
from jax.experimental.pallas import tpu as pltpu

NUM_CLASSES = 18
CLASS_PAD = 128                  # lane-dense padded class dim (sliced to 18 at the end)
HIDDEN = 1024                    # fixed by the module: Linear(cell_feature_dim, 1024)
VMEM_LIMIT = 32 * 1024 * 1024    # explicit scoped-VMEM budget (safe on v5e/v6e/v7x)


def _round_up(x, m):
    return ((x + m - 1) // m) * m


def _pick_row_tile(hw, cap=512):
    """Largest lane-aligned pixel tile <= cap that divides HW (else the full HW)."""
    for t in (512, 384, 256, 128):
        if t <= cap and hw % t == 0:
            return t
    return hw


def _pad_last(a, target):
    pad = target - a.shape[-1]
    if pad <= 0:
        return a
    widths = [(0, 0)] * (a.ndim - 1) + [(0, pad)]
    return jnp.pad(a, widths)


# ----------------------------------------------------------------------------
# Kernel 1: fused backbone (1x1 conv + ReLU) + RoI mask accumulation
#           + per-image class-map max (AdaptiveMaxPool2d fallback).
#           feature_maps / class_maps never touch HBM.
# ----------------------------------------------------------------------------
def _fused_backbone_roi_kernel(x_ref, m_ref, wbbT_ref, bbb_ref, wfcT_ref, bfc_ref,
                               sums_ref, pool_ref):
    x = x_ref[0]                                                  # (Cin, TM) bf16
    # backbone 1x1 conv + ReLU in feature-major orientation: (F, Cin) @ (Cin, TM)
    fT = jnp.dot(wbbT_ref[...], x, preferred_element_type=jnp.float32)   # (F, TM)
    fT = jnp.maximum(fT + bbb_ref[...], 0.0)
    fT_bf = fT.astype(jnp.bfloat16)

    # per-cell masked feature sums for this pixel tile:
    #   (MAXC, TM) x (F, TM)^T -> (MAXC, F), accumulated into the resident output.
    part = lax.dot_general(m_ref[0], fT_bf,
                           dimension_numbers=(((1,), (1,)), ((), ())),
                           preferred_element_type=jnp.float32)

    # transient class logits for this tile (class-major) -> maxpool fallback max
    cT = jnp.dot(wfcT_ref[...], fT_bf,
                 preferred_element_type=jnp.float32) + bfc_ref[...]       # (CP, TM)
    tile_max = jnp.max(cT, axis=1, keepdims=True)                         # (CP, 1)

    @pl.when(pl.program_id(1) == 0)
    def _():
        sums_ref[0] = part
        pool_ref[0] = tile_max

    @pl.when(pl.program_id(1) != 0)
    def _():
        sums_ref[0] = sums_ref[0] + part
        pool_ref[0] = jnp.maximum(pool_ref[0], tile_max)


def fused_backbone_roi(x_bcin_hw, masks_padded, wbbT, b_bb_col, wfcT, b_fc_col):
    """x: (B, Cin, HW) bf16, masks_padded: (B, MAXC, HW) bf16
    -> cell feature sums (B, MAXC, F) f32, per-image class-map max (B, CP, 1) f32."""
    B, Cin, HW = x_bcin_hw.shape
    MAXC = masks_padded.shape[1]
    F = wbbT.shape[0]
    CP = wfcT.shape[0]
    TM = _pick_row_tile(HW)
    grid = (B, HW // TM)
    return pl.pallas_call(
        _fused_backbone_roi_kernel,
        out_shape=(
            jax.ShapeDtypeStruct((B, MAXC, F), jnp.float32),
            jax.ShapeDtypeStruct((B, CP, 1), jnp.float32),
        ),
        grid_spec=pltpu.PrefetchScalarGridSpec(
            num_scalar_prefetch=0,
            grid=grid,
            in_specs=[
                pl.BlockSpec((1, Cin, TM), lambda b, m: (b, 0, m)),    # image rows
                pl.BlockSpec((1, MAXC, TM), lambda b, m: (b, 0, m)),   # cell masks
                pl.BlockSpec((F, Cin), lambda b, m: (0, 0)),           # w_bb^T
                pl.BlockSpec((F, 1), lambda b, m: (0, 0)),             # b_bb (col)
                pl.BlockSpec((CP, F), lambda b, m: (0, 0)),            # w_fc^T
                pl.BlockSpec((CP, 1), lambda b, m: (0, 0)),            # b_fc (col)
            ],
            out_specs=[
                pl.BlockSpec((1, MAXC, F), lambda b, m: (b, 0, 0)),    # resident over m
                pl.BlockSpec((1, CP, 1), lambda b, m: (b, 0, 0)),      # resident over m
            ],
        ),
        compiler_params=pltpu.CompilerParams(
            dimension_semantics=("parallel", "arbitrary"),
            vmem_limit_bytes=VMEM_LIMIT,
        ),
    )(x_bcin_hw, masks_padded, wbbT, b_bb_col, wfcT, b_fc_col)


# ----------------------------------------------------------------------------
# Kernel 2: fused cell head (gridded over images, scalar-prefetched counts):
#   masked-average finalize, algebraic class_roi (feats @ w_fc + b_fc),
#   fc_cell_weights MLP, per-image softmax-over-cells aggregation,
#   AdaptiveMaxPool2d fallback for images with no cells.
# ----------------------------------------------------------------------------
def _cell_head_kernel(cnt_ref, sums_ref, den_ref, w1_ref, b1_ref, w2_ref, b2_ref,
                      wfc_ref, bfc_ref, pool_ref, o_ref):
    b = pl.program_id(0)
    cnt = cnt_ref[b]

    # masked-average RoI features; padded slots have denom==1 and sums==0 -> 0.
    feats = sums_ref[0] / den_ref[0]                              # (MAXC, F) f32
    f_bf = feats.astype(jnp.bfloat16)

    # class_roi reconstructed algebraically: avg(f) @ w_fc + b_fc == avg(f @ w_fc + b_fc)
    clog = jnp.dot(f_bf, wfc_ref[...],
                   preferred_element_type=jnp.float32) + bfc_ref[...]     # (MAXC, CP)

    # fc_cell_weights: Linear -> ReLU -> Dropout(identity) -> Linear
    h = jnp.dot(f_bf, w1_ref[...],
                preferred_element_type=jnp.float32) + b1_ref[...]
    h = jnp.maximum(h, 0.0).astype(jnp.bfloat16)
    wlog = jnp.dot(h, w2_ref[...],
                   preferred_element_type=jnp.float32) + b2_ref[...]      # (MAXC, CP)

    # per-image, per-class softmax over this image's cells (padded slots masked out)
    row = lax.broadcasted_iota(jnp.int32, (wlog.shape[0], 1), 0)
    valid = row < cnt
    wm = jnp.where(valid, wlog, jnp.float32(-1e30))
    mx = jnp.max(wm, axis=0, keepdims=True)
    e = jnp.where(valid, jnp.exp(wm - mx), 0.0)
    denom = jnp.maximum(jnp.sum(e, axis=0, keepdims=True), jnp.float32(1e-30))
    attended = jnp.sum(e * clog, axis=0, keepdims=True) / denom           # (1, CP)

    # AdaptiveMaxPool2d((1,1)) fallback for images with no cell segmentation
    o_ref[0] = jnp.where(cnt > 0, attended, pool_ref[0])


def cell_head(counts, cell_sums, denoms, w1, b1, w2, b2, w_fc, b_fc, pooled_row):
    B, MAXC, F = cell_sums.shape
    HID = w1.shape[1]
    CP = w_fc.shape[1]
    return pl.pallas_call(
        _cell_head_kernel,
        out_shape=jax.ShapeDtypeStruct((B, 1, CP), jnp.float32),
        grid_spec=pltpu.PrefetchScalarGridSpec(
            num_scalar_prefetch=1,                                 # counts -> SMEM
            grid=(B,),
            in_specs=[
                pl.BlockSpec((1, MAXC, F), lambda b, cnt: (b, 0, 0)),
                pl.BlockSpec((1, MAXC, 1), lambda b, cnt: (b, 0, 0)),
                pl.BlockSpec((F, HID), lambda b, cnt: (0, 0)),
                pl.BlockSpec((1, HID), lambda b, cnt: (0, 0)),
                pl.BlockSpec((HID, CP), lambda b, cnt: (0, 0)),
                pl.BlockSpec((1, CP), lambda b, cnt: (0, 0)),
                pl.BlockSpec((F, CP), lambda b, cnt: (0, 0)),
                pl.BlockSpec((1, CP), lambda b, cnt: (0, 0)),
                pl.BlockSpec((1, 1, CP), lambda b, cnt: (b, 0, 0)),
            ],
            out_specs=pl.BlockSpec((1, 1, CP), lambda b, cnt: (b, 0, 0)),
        ),
        compiler_params=pltpu.CompilerParams(
            dimension_semantics=("parallel",),
            vmem_limit_bytes=VMEM_LIMIT,
        ),
    )(counts, cell_sums, denoms, w1, b1, w2, b2, w_fc, b_fc, pooled_row)


# ----------------------------------------------------------------------------
# Full forward pass (layout plumbing in plain JAX, all compute in the kernels)
# ----------------------------------------------------------------------------
def attn_weight_roi_localizer_forward(cell_img, cell_masks, cell_counts, params,
                                      max_cells=None):
    B, Cin, H, W = cell_img.shape
    HW = H * W
    N = cell_masks.shape[0]
    CP = CLASS_PAD
    F = params["w_bb"].shape[1]

    counts = cell_counts.astype(jnp.int32)
    if max_cells is None:
        max_cells = int(jax.device_get(jnp.max(counts)))   # needs concrete counts
    MAXC = max(8, _round_up(max_cells, 8))

    # Cells -> padded (B, MAXC, ...) layout. Assumes cells are sorted by image
    # and sum(counts) == N (same invariant as the PyTorch module).
    offsets = jnp.concatenate([jnp.zeros((1,), jnp.int32), jnp.cumsum(counts)[:-1]])
    cell_batch = jnp.repeat(jnp.arange(B, dtype=jnp.int32), counts,
                            total_repeat_length=N)
    cell_slot = jnp.arange(N, dtype=jnp.int32) - offsets[cell_batch]

    masks_flat = cell_masks.reshape(N, HW).astype(jnp.float32)
    masks_padded = jnp.zeros((B, MAXC, HW), jnp.bfloat16).at[
        cell_batch, cell_slot].set(masks_flat.astype(jnp.bfloat16))

    # mask pixel counts (denominator of the masked average); padded slots use 1.
    # TODO(synk): PyTorch would produce NaN for a real all-zero mask; we clamp instead.
    denom = jnp.maximum(jnp.sum(masks_flat, axis=1), 1e-6)
    denom_padded = jnp.ones((B, MAXC), jnp.float32).at[cell_batch, cell_slot].set(denom)
    denom_padded = denom_padded.reshape(B, MAXC, 1)

    # Inputs / params: bf16 MXU operands, f32 biases, class dim padded 18 -> 128,
    # input channels padded to a sublane multiple.  No NCHW -> NHWC transpose.
    CinP = max(8, _round_up(Cin, 8))
    x = jnp.pad(cell_img.reshape(B, Cin, HW),
                ((0, 0), (0, CinP - Cin), (0, 0))).astype(jnp.bfloat16)
    w_bb_p = jnp.pad(params["w_bb"], ((0, CinP - Cin), (0, 0)))
    wbbT = jnp.transpose(w_bb_p).astype(jnp.bfloat16)              # (F, CinP)
    b_bb_col = params["b_bb"].reshape(F, 1).astype(jnp.float32)

    w_fc_p = _pad_last(params["w_fc"], CP)                         # (F, CP)
    b_fc_p = _pad_last(params["b_fc"], CP)                         # (CP,)
    wfcT = jnp.transpose(w_fc_p).astype(jnp.bfloat16)              # (CP, F)
    w_fc_row = w_fc_p.astype(jnp.bfloat16)                         # (F, CP)
    b_fc_col = b_fc_p.reshape(CP, 1).astype(jnp.float32)
    b_fc_row = b_fc_p.reshape(1, CP).astype(jnp.float32)

    w1 = params["w1"].astype(jnp.bfloat16)
    b1 = params["b1"].reshape(1, -1).astype(jnp.float32)
    w2 = _pad_last(params["w2"], CP).astype(jnp.bfloat16)
    b2 = _pad_last(params["b2"], CP).reshape(1, CP).astype(jnp.float32)

    # Kernel 1: one pass over the pixels -> per-cell feature sums + maxpool fallback.
    cell_sums, pooled_col = fused_backbone_roi(x, masks_padded, wbbT, b_bb_col,
                                               wfcT, b_fc_col)
    pooled_row = pooled_col.reshape(B, 1, CP)

    # Kernel 2: RoI finalize + algebraic class logits + MLP + per-image aggregation.
    logits_p = cell_head(counts, cell_sums, denom_padded, w1, b1, w2, b2,
                         w_fc_row, b_fc_row, pooled_row)
    return logits_p.reshape(B, CP)[:, :NUM_CLASSES]


# ----------------------------------------------------------------------------
# Pure-JAX reference (f32) for a correctness check
# ----------------------------------------------------------------------------
def _reference_forward(cell_img, cell_masks, cell_counts, params):
    B, Cin, H, W = cell_img.shape
    HW = H * W
    x = cell_img.reshape(B, Cin, HW).transpose(0, 2, 1).astype(jnp.float32)  # (B,HW,Cin)
    f = jnp.maximum(jnp.einsum("bpc,cf->bpf", x, params["w_bb"]) + params["b_bb"], 0.0)
    c = jnp.einsum("bpf,fk->bpk", f, params["w_fc"]) + params["b_fc"]
    masks = cell_masks.reshape(-1, HW).astype(jnp.float32)
    counts = [int(v) for v in jax.device_get(cell_counts)]
    logits, i = [], 0
    for b, cnt in enumerate(counts):
        if cnt > 0:
            m = masks[i:i + cnt]
            den = jnp.maximum(m.sum(axis=1, keepdims=True), 1e-6)
            feats = (m @ f[b]) / den
            clog = feats @ params["w_fc"] + params["b_fc"]
            h = jnp.maximum(feats @ params["w1"] + params["b1"], 0.0)
            wlog = h @ params["w2"] + params["b2"]
            attn = jax.nn.softmax(wlog, axis=0)
            logits.append(jnp.sum(attn * clog, axis=0, keepdims=True))
        else:
            logits.append(jnp.max(c[b], axis=0, keepdims=True))
        i += cnt
    return jnp.concatenate(logits, axis=0)


# ----------------------------------------------------------------------------
# Deterministic parameter init + example run
# ----------------------------------------------------------------------------
def init_params(key, cin, feat_dim):
    ks = jax.random.split(key, 8)
    s = 0.05
    return {
        "w_bb": s * jax.random.normal(ks[0], (cin, feat_dim), jnp.float32),
        "b_bb": s * jax.random.normal(ks[1], (feat_dim,), jnp.float32),
        "w_fc": s * jax.random.normal(ks[2], (feat_dim, NUM_CLASSES), jnp.float32),
        "b_fc": s * jax.random.normal(ks[3], (NUM_CLASSES,), jnp.float32),
        "w1": s * jax.random.normal(ks[4], (feat_dim, HIDDEN), jnp.float32),
        "b1": s * jax.random.normal(ks[5], (HIDDEN,), jnp.float32),
        "w2": s * jax.random.normal(ks[6], (HIDDEN, NUM_CLASSES), jnp.float32),
        "b2": s * jax.random.normal(ks[7], (NUM_CLASSES,), jnp.float32),
    }


if __name__ == "__main__":
    B, Cin, H, W = 2, 4, 16, 16
    FEAT_DIM = 128        # cell_feature_dim (lane-dense small example; 2048 in the real module)
    N_CELLS = 6
    counts = jnp.array([4, 2], dtype=jnp.int32)   # cells per image (sum == N_CELLS)

    key = jax.random.PRNGKey(0)
    k_img, k_mask, k_par = jax.random.split(key, 3)

    cell_img = jax.random.normal(k_img, (B, Cin, H, W), jnp.float32)
    cell_masks = jax.random.bernoulli(k_mask, 0.5, (N_CELLS, H, W)).astype(jnp.float32)
    params = init_params(k_par, Cin, FEAT_DIM)

    logits = attn_weight_roi_localizer_forward(cell_img, cell_masks, counts, params)
    logits = jax.block_until_ready(logits)

    assert logits.shape == (B, NUM_CLASSES)
    assert bool(jnp.all(jnp.isfinite(logits)))

    ref = _reference_forward(cell_img, cell_masks, counts, params)
    assert bool(jnp.allclose(logits, ref, rtol=2e-2, atol=2e-2)), (
        "mismatch vs. pure-JAX reference")

    print("KERNEL_OK")
</pallas_src>

<mosaic_0001>
module attributes {stable_mosaic.version = 11 : i64} {
  func.func @_fused_backbone_roi_kernel(%arg0: i32, %arg1: i32, %arg2: memref<1x8x256xbf16, #tpu.memory_space<vmem>>, %arg3: memref<1x8x256xbf16, #tpu.memory_space<vmem>>, %arg4: memref<128x8xbf16, #tpu.memory_space<vmem>>, %arg5: memref<128x1xf32, #tpu.memory_space<vmem>>, %arg6: memref<128x128xbf16, #tpu.memory_space<vmem>>, %arg7: memref<128x1xf32, #tpu.memory_space<vmem>>, %arg8: memref<1x8x128xf32, #tpu.memory_space<vmem>>, %arg9: memref<1x128x1xf32, #tpu.memory_space<vmem>>) attributes {dimension_semantics = [#tpu.dimension_semantics<parallel>, #tpu.dimension_semantics<arbitrary>], iteration_bounds = array<i64: 2, 1>, scalar_prefetch = 0 : i64, scratch_operands = 0 : i64, tpu.core_type = #tpu.core_type<tc>, window_params = [{transform_indices = @transform_0, window_bounds = array<i64: 1, 8, 256>}, {transform_indices = @transform_1, window_bounds = array<i64: 1, 8, 256>}, {pipeline_mode = #tpu.pipeline_mode<synchronous>, transform_indices = @transform_2, window_bounds = array<i64: 128, 8>}, {pipeline_mode = #tpu.pipeline_mode<synchronous>, transform_indices = @transform_3, window_bounds = array<i64: 128, 1>}, {pipeline_mode = #tpu.pipeline_mode<synchronous>, transform_indices = @transform_4, window_bounds = array<i64: 128, 128>}, {pipeline_mode = #tpu.pipeline_mode<synchronous>, transform_indices = @transform_5, window_bounds = array<i64: 128, 1>}, {transform_indices = @transform_6, window_bounds = array<i64: 1, 8, 128>}, {transform_indices = @transform_7, window_bounds = array<i64: 1, 128, 1>}]} {
    %c0 = arith.constant 0 : index
    %c0_0 = arith.constant 0 : index
    %c0_1 = arith.constant 0 : index
    %0 = vector.load %arg2[%c0, %c0_0, %c0_1] : memref<1x8x256xbf16, #tpu.memory_space<vmem>>, vector<1x8x256xbf16>
    %1 = vector.shape_cast %0 : vector<1x8x256xbf16> to vector<8x256xbf16>
    %c0_2 = arith.constant 0 : index
    %c0_3 = arith.constant 0 : index
    %2 = vector.load %arg4[%c0_2, %c0_3] : memref<128x8xbf16, #tpu.memory_space<vmem>>, vector<128x8xbf16>
    %cst = arith.constant dense<0.000000e+00> : vector<128x256xf32>
    %3 = tpu.matmul %2, %1, %cst {dimension_numbers = #tpu.dot_dimension_numbers<[1], [0], [0], [1], [0, 0, 1, 1], [], []>} : vector<128x8xbf16>, vector<8x256xbf16>, vector<128x256xf32> -> vector<128x256xf32>
    %c0_4 = arith.constant 0 : index
    %c0_5 = arith.constant 0 : index
    %4 = vector.load %arg5[%c0_4, %c0_5] : memref<128x1xf32, #tpu.memory_space<vmem>>, vector<128x1xf32>
    %5 = vector.broadcast %4 : vector<128x1xf32> to vector<128x256xf32>
    %6 = arith.addf %3, %5 : vector<128x256xf32>
    %cst_6 = arith.constant 0.000000e+00 : f32
    %7 = vector.broadcast %cst_6 : f32 to vector<128x256xf32>
    %8 = arith.maximumf %6, %7 : vector<128x256xf32>
    %9 = arith.truncf %8 : vector<128x256xf32> to vector<128x256xbf16>
    %c0_7 = arith.constant 0 : index
    %c0_8 = arith.constant 0 : index
    %c0_9 = arith.constant 0 : index
    %10 = vector.load %arg3[%c0_7, %c0_8, %c0_9] : memref<1x8x256xbf16, #tpu.memory_space<vmem>>, vector<1x8x256xbf16>
    %11 = vector.shape_cast %10 : vector<1x8x256xbf16> to vector<8x256xbf16>
    %cst_10 = arith.constant dense<0.000000e+00> : vector<8x128xf32>
    %12 = tpu.matmul %11, %9, %cst_10 {dimension_numbers = #tpu.dot_dimension_numbers<[1], [1], [0], [0], [0, 0, 1, 0], [], []>} : vector<8x256xbf16>, vector<128x256xbf16>, vector<8x128xf32> -> vector<8x128xf32>
    %c0_11 = arith.constant 0 : index
    %c0_12 = arith.constant 0 : index
    %13 = vector.load %arg6[%c0_11, %c0_12] : memref<128x128xbf16, #tpu.memory_space<vmem>>, vector<128x128xbf16>
    %cst_13 = arith.constant dense<0.000000e+00> : vector<128x256xf32>
    %14 = tpu.matmul %13, %9, %cst_13 {dimension_numbers = #tpu.dot_dimension_numbers<[1], [0], [0], [1], [0, 0, 1, 1], [], []>} : vector<128x128xbf16>, vector<128x256xbf16>, vector<128x256xf32> -> vector<128x256xf32>
    %c0_14 = arith.constant 0 : index
    %c0_15 = arith.constant 0 : index
    %15 = vector.load %arg7[%c0_14, %c0_15] : memref<128x1xf32, #tpu.memory_space<vmem>>, vector<128x1xf32>
    %16 = vector.broadcast %15 : vector<128x1xf32> to vector<128x256xf32>
    %17 = arith.addf %14, %16 : vector<128x256xf32>
    %cst_16 = arith.constant dense<0xFF800000> : vector<128xf32>
    %18 = vector.multi_reduction <maximumf>, %17, %cst_16 [1] : vector<128x256xf32> to vector<128xf32>
    %19 = vector.shape_cast %18 : vector<128xf32> to vector<128x1xf32>
    %c0_i32 = arith.constant 0 : i32
    %20 = arith.cmpi eq, %arg1, %c0_i32 : i32
    %21 = arith.extui %20 : i1 to i32
    %c0_i32_17 = arith.constant 0 : i32
    %22 = arith.cmpi ne, %21, %c0_i32_17 : i32
    scf.if %22 {
      %c0_20 = arith.constant 0 : index
      %c0_21 = arith.constant 0 : index
      %c0_22 = arith.constant 0 : index
      %26 = vector.load %arg8[%c0_20, %c0_21, %c0_22] : memref<1x8x128xf32, #tpu.memory_space<vmem>>, vector<1x8x128xf32>
      %27 = vector.shape_cast %26 : vector<1x8x128xf32> to vector<8x128xf32>
      %28 = vector.shape_cast %12 : vector<8x128xf32> to vector<1x8x128xf32>
      tpu.vector_store %arg8[%c0_20, %c0_21, %c0_22], %28 {strides = array<i32>} : memref<1x8x128xf32, #tpu.memory_space<vmem>>, vector<1x8x128xf32>,
      %c0_23 = arith.constant 0 : index
      %c0_24 = arith.constant 0 : index
      %c0_25 = arith.constant 0 : index
      %29 = vector.load %arg9[%c0_23, %c0_24, %c0_25] : memref<1x128x1xf32, #tpu.memory_space<vmem>>, vector<1x128x1xf32>
      %30 = vector.shape_cast %29 : vector<1x128x1xf32> to vector<128x1xf32>
      %31 = vector.shape_cast %19 : vector<128x1xf32> to vector<1x128x1xf32>
      tpu.vector_store %arg9[%c0_23, %c0_24, %c0_25], %31 {strides = array<i32>} : memref<1x128x1xf32, #tpu.memory_space<vmem>>, vector<1x128x1xf32>,
    } else {
    }
    %c0_i32_18 = arith.constant 0 : i32
    %23 = arith.cmpi ne, %arg1, %c0_i32_18 : i32
    %24 = arith.extui %23 : i1 to i32
    %c0_i32_19 = arith.constant 0 : i32
    %25 = arith.cmpi ne, %24, %c0_i32_19 : i32
    scf.if %25 {
      %c0_20 = arith.constant 0 : index
      %c0_21 = arith.constant 0 : index
      %c0_22 = arith.constant 0 : index
      %26 = vector.load %arg8[%c0_20, %c0_21, %c0_22] : memref<1x8x128xf32, #tpu.memory_space<vmem>>, vector<1x8x128xf32>
      %27 = vector.shape_cast %26 : vector<1x8x128xf32> to vector<8x128xf32>
      %28 = arith.addf %27, %12 : vector<8x128xf32>
      %c0_23 = arith.constant 0 : index
      %c0_24 = arith.constant 0 : index
      %c0_25 = arith.constant 0 : index
      %29 = vector.load %arg8[%c0_23, %c0_24, %c0_25] : memref<1x8x128xf32, #tpu.memory_space<vmem>>, vector<1x8x128xf32>
      %30 = vector.shape_cast %29 : vector<1x8x128xf32> to vector<8x128xf32>
      %31 = vector.shape_cast %28 : vector<8x128xf32> to vector<1x8x128xf32>
      tpu.vector_store %arg8[%c0_23, %c0_24, %c0_25], %31 {strides = array<i32>} : memref<1x8x128xf32, #tpu.memory_space<vmem>>, vector<1x8x128xf32>,
      %c0_26 = arith.constant 0 : index
      %c0_27 = arith.constant 0 : index
      %c0_28 = arith.constant 0 : index
      %32 = vector.load %arg9[%c0_26, %c0_27, %c0_28] : memref<1x128x1xf32, #tpu.memory_space<vmem>>, vector<1x128x1xf32>
      %33 = vector.shape_cast %32 : vector<1x128x1xf32> to vector<128x1xf32>
      %34 = arith.maximumf %33, %19 : vector<128x1xf32>
      %c0_29 = arith.constant 0 : index
      %c0_30 = arith.constant 0 : index
      %c0_31 = arith.constant 0 : index
      %35 = vector.load %arg9[%c0_29, %c0_30, %c0_31] : memref<1x128x1xf32, #tpu.memory_space<vmem>>, vector<1x128x1xf32>
      %36 = vector.shape_cast %35 : vector<1x128x1xf32> to vector<128x1xf32>
      %37 = vector.shape_cast %34 : vector<128x1xf32> to vector<1x128x1xf32>
      tpu.vector_store %arg9[%c0_29, %c0_30, %c0_31], %37 {strides = array<i32>} : memref<1x128x1xf32, #tpu.memory_space<vmem>>, vector<1x128x1xf32>,
    } else {
    }
    return
  }
  func.func @transform_0(%arg0: i32, %arg1: i32) -> (i32, i32, i32) {
    %c0_i32 = arith.constant 0 : i32
    %c0_i32_0 = arith.constant 0 : i32
    return %arg0, %c0_i32, %arg1 : i32, i32, i32
  }
  func.func @transform_1(%arg0: i32, %arg1: i32) -> (i32, i32, i32) {
    %c0_i32 = arith.constant 0 : i32
    %c0_i32_0 = arith.constant 0 : i32
    return %arg0, %c0_i32, %arg1 : i32, i32, i32
  }
  func.func @transform_2(%arg0: i32, %arg1: i32) -> (i32, i32) {
    %c0_i32 = arith.constant 0 : i32
    %c0_i32_0 = arith.constant 0 : i32
    %c0_i32_1 = arith.constant 0 : i32
    return %c0_i32, %c0_i32_0 : i32, i32
  }
  func.func @transform_3(%arg0: i32, %arg1: i32) -> (i32, i32) {
    %c0_i32 = arith.constant 0 : i32
    %c0_i32_0 = arith.constant 0 : i32
    %c0_i32_1 = arith.constant 0 : i32
    return %c0_i32, %c0_i32_0 : i32, i32
  }
  func.func @transform_4(%arg0: i32, %arg1: i32) -> (i32, i32) {
    %c0_i32 = arith.constant 0 : i32
    %c0_i32_0 = arith.constant 0 : i32
    %c0_i32_1 = arith.constant 0 : i32
    return %c0_i32, %c0_i32_0 : i32, i32
  }
  func.func @transform_5(%arg0: i32, %arg1: i32) -> (i32, i32) {
    %c0_i32 = arith.constant 0 : i32
    %c0_i32_0 = arith.constant 0 : i32
    %c0_i32_1 = arith.constant 0 : i32
    return %c0_i32, %c0_i32_0 : i32, i32
  }
  func.func @transform_6(%arg0: i32, %arg1: i32) -> (i32, i32, i32) {
    %c0_i32 = arith.constant 0 : i32
    %c0_i32_0 = arith.constant 0 : i32
    %c0_i32_1 = arith.constant 0 : i32
    return %arg0, %c0_i32, %c0_i32_0 : i32, i32, i32
  }
  func.func @transform_7(%arg0: i32, %arg1: i32) -> (i32, i32, i32) {
    %c0_i32 = arith.constant 0 : i32
    %c0_i32_0 = arith.constant 0 : i32
    %c0_i32_1 = arith.constant 0 : i32
    return %arg0, %c0_i32, %c0_i32_0 : i32, i32, i32
  }
}

</mosaic_0001>

<bundles_post_ra>
// kernel: tpu_custom_call.1
= control target key start
LH: loop header
LB: loop body
LE: loop exit
PB: predicated region body
PF: predicated region fallthrough
CT: control target
= control target key end

     0   :  { %13 = vsyncpa [#allocation3], 0  ;;  %s1945_s0 = inlined_call_operand.vmem [shape: bf16[2,8,256], index: 0, kind: input, shape index: {}]   ;;  %s1946_s1 = inlined_call_operand.vmem [shape: bf16[2,8,256], index: 1, kind: input, shape index: {}]   ;;  %s1947_s2 = inlined_call_operand.vmem [shape: bf16[128,8], index: 2, kind: input, shape index: {}]   ;;  %s1948_s3 = inlined_call_operand.vmem [shape: f32[128,1], index: 3, kind: input, shape index: {}]   ;;  %s1949_s4 = inlined_call_operand.vmem [shape: bf16[128,128], index: 4, kind: input, shape index: {}]   ;;  %s1950_s5 = inlined_call_operand.vmem [shape: f32[128,1], index: 5, kind: input, shape index: {}]   ;;  %s1951_s6 = inlined_call_operand.hbm [shape: f32[2,8,128], index: 6, kind: output, shape index: {0}]   ;;  %s1952_s7 = inlined_call_operand.vmem [shape: f32[2,128,1], index: 7, kind: output, shape index: {1}]  }
   0x1   :  { %15 = vsyncpa [#allocation3 + $0x1], 0  ;;  %s1537_s24 = smov 0   ;;  %s1539_s25 = smov 0  }
   0x2   :  { %s1541_s26 = smov 0   ;;  %s1543_s27 = smov 0  }
   0x3   :  { %s1545_s28 = smov 0   ;;  %s1547_s29 = smov 0  }
   0x4 LB: > { %s1291_s30 = sadd.s32 4294967295, %s1493_s29   ;;  %s1292_s8 = sadd.s32 4294967294, %s1493_s29   ;;  %s1493_s29 = sphi %s1547_s29, %s21_s29   ;;  %s1489_s28 = sphi %s1545_s28, %s1959_s28   ;;  %s1485_s27 = sphi %s1543_s27, %s1958_s27   ;;  %s1481_s26 = sphi %s1541_s26, %s1957_s26   ;;  %s1477_s25 = sphi %s1539_s25, %s1956_s25   ;;  %s1473_s24 = sphi %s1537_s24, %s1955_s24  }
   0x5   : > { %s33_s9 = sadd.s32 1, %s1489_s28  ;;  %s180_s10 = sadd.s32 1, %s1481_s26 }
   0x6   : > { %p35_p0 = scmp.ge.s32.totalorder %s33_s9, 2  ;;  %p190_p1 = scmp.ne.s32.totalorder %s1481_s26, %s1477_s25 }
   0x7   : > { %p191_p2 = scmp.eq.s32.totalorder %s1291_s30, 1  ;;  %p196_p3 = scmp.ne.s32.totalorder %s1477_s25, %s1473_s24 }
   0x8   : > { %s1961_s9 = smov (%p35_p0, %s33_s9), 0  ;;  %p197_p5 = scmp.eq.s32.totalorder %s1292_s8, 1 }
   0x9   : > { %p1577_p4 = por %p191_p2, %p190_p1  ;;  %s177_s12 = ssub.s32 %s1489_s28, %s1961_s9 }
   0xa   : > { %p1295_p6 = scmp.ge.s32.totalorder %s1493_s29, 1  ;;  %p178_p7 = scmp.eq.s32.totalorder %s177_s12, 0 }
   0xb   : > { %p1584_p8 = por %p197_p5, %p196_p3  ;;  %p279_p9 = scmp.lt.s32.totalorder %s1493_s29, 3 }
   0xc   : > { %s1590_s14 = scalar_select %p178_p7, %s1481_s26, %s180_s10  }
   0xd   : > { %p280_p10 = pnand %p1295_p6, %p279_p9 }
   0xe   : > { %p330_p11 = scmp.lt.s32.totalorder (!%p280_p10), %s1485_s27, 1  ;;  %s319_s18 = sand.u32 (!%p280_p10), 1, %s1477_s25  }
   0xf   : > { %283 = sbr.rel (%p280_p10) target bundleno = 722 (0x2d2), region = 44  ;;  %s1333_s22 = sshll.u32 (!%p280_p10), %s1485_s27, 7 }
  0x10   : > { %s1496_s12 = smov (!%p280_p10), [#allocation2]  }
  0x11   : > { %s1421_s17 = sshll.u32 (!%p280_p10), %s1496_s12, 4  ;;  %s1422_s17 = int_to_ptr.vmem [resolvable:$false] %s1421_s17 }
  0x14   : > { %v1495_v0 = vmov 0   ;;  %s1596_s15 = scalar_select %p330_p11, %s1485_s27, 1  ;;  %vm538_vm0 = vcmask 1043456   ;;  %v386_v2 = vld [vmem:[%s1948_s3 + $0x70] sm:$0xff]  ;;  %v384_v5 = vld [vmem:[%s1948_s3 + $0x60] sm:$0xff]  ;;  %v387_v6 = vld [vmem:[%s1948_s3 + $0x78] sm:$0xff] }
  0x15   : > { %577 = vmatprep.mubr.bf16.mxu1 %v1495_v0  ;;  %1395 = vset.pattern.permute.xlu0 %v1495_v0  ;;  %v1399_v8 = vld [vmem:[%s1947_s2] sm:$0xff]   ;;  %v385_v9 = vld [vmem:[%s1948_s3 + $0x68] sm:$0xff]  ;;  %vm513_vm1 = vcmask 64512   ;;  %v382_v10 = vld [vmem:[%s1948_s3 + $0x50] sm:$0xff] }
  0x16   : > { %1396 = vset.pattern.permute.xlu1 %v1495_v0  ;;  %946 = vmatprep.mubr.bf16.mxu0 %v1495_v0  ;;  %s1336_s16 = sshll.u32 %s1596_s15, 3  ;;  %v383_v11 = vld [vmem:[%s1948_s3 + $0x58] sm:$0xff]  ;;  %v380_v12 = vld [vmem:[%s1948_s3 + $0x40] sm:$0xff]  ;;  %v1400_v13 = vld [vmem:[%s1947_s2 + $0x8] sm:$0xff]  }
  0x17   : > { %s337_s19 = scalar_lea.vmem %s1945_s0, %s1336_s16  ;;  %460 = vperm.xlu0 %1395, %v386_v2   ;;  %450 = vperm.xlu1 %1396, %v384_v5   ;;  %v381_v14 = vld [vmem:[%s1948_s3 + $0x48] sm:$0xff]  ;;  %v378_v15 = vld [vmem:[%s1948_s3 + $0x30] sm:$0xff]  ;;  %v379_v16 = vld [vmem:[%s1948_s3 + $0x38] sm:$0xff]  ;;  %s347_s8 = scalar_lea.vmem %s1946_s1, %s1336_s16 }
  0x18   : > { %v355_v1 = vld [vmem:[%s337_s19] sm:$0xff]  ;;  %v1401_v18 = vld [vmem:[%s1947_s2 + $0x10] sm:$0xff]   ;;  %v377_v19 = vld [vmem:[%s1948_s3 + $0x28] sm:$0xff]  ;;  %s1296_s19 = sshll.u32 %s319_s18, 3  ;;  %s1154_s16 = scalar_lea.sflag [#allocation3], %s319_s18 }
  0x19   : > { %v1312_v3 = vcombine.high %v355_v1, %v355_v1  ;;  %v1311_v4 = vcombine.low %v355_v1, %v355_v1  ;;  %v376_v17 = vld [vmem:[%s1948_s3 + $0x20] sm:$0xff]  ;;  %v374_v20 = vld [vmem:[%s1948_s3 + $0x10] sm:$0xff]  ;;  %v375_v21 = vld [vmem:[%s1948_s3 + $0x18] sm:$0xff]  ;;  %s321_s20 = scalar_lea.vmem [#allocation2], %s1296_s19  ;;  %s1423_s19 = scalar_lea.vmem %s1422_s17, 256 }
  0x1a   : > { %v372_v22 = vld [vmem:[%s1948_s3] sm:$0xff]  ;;  %v1402_v23 = vld [vmem:[%s1947_s2 + $0x18] sm:$0xff]   ;;  %v373_v24 = vld [vmem:[%s1948_s3 + $0x8] sm:$0xff]  ;;  %s1172_s21 = sshll.u32 %s321_s20, 4  ;;  %s1173_s21 = int_to_ptr.vmem [resolvable:$true] %s1172_s21 }
  0x1b   : > { %1313 = vmatprep.subr.msk.bf16.mxu1 %vm538_vm0, %v1312_v3  ;;  %v540_v7 = vsel %vm538_vm0, %v1311_v4, 0  ;;  %465 = vperm.xlu0 %1395, %v387_v6   ;;  %v770_v25 = vld [vmem:[%s1950_s5] sm:$0xff]  ;;  %v771_v26 = vld [vmem:[%s1950_s5 + $0x8] sm:$0xff]  ;;  %v772_v27 = vld [vmem:[%s1950_s5 + $0x10] sm:$0xff]  ;;  %s1417_s10 = scalar_lea.vmem %s1173_s21, 128  ;;  %p1424_p1 = scmp.lt.s32.totalorder %s1173_s21, %s1422_s17 }
  0x1c   : > { %560 = vmatpush1.bf16.msra.mxu1 %v540_v7  ;;  %455 = vperm.xlu1 %1396, %v385_v9   ;;  %v1403_v28 = vld [vmem:[%s1947_s2 + $0x20] sm:$0xff]   ;;  %v773_v29 = vld [vmem:[%s1950_s5 + $0x18] sm:$0xff]  ;;  %v775_v31 = vld [vmem:[%s1950_s5 + $0x28] sm:$0xff]  ;;  %p1418_p12 = scmp.ne.s32.totalorder %s1173_s21, %s1417_s10  ;;  %p1425_p2 = scmp.lt.s32.totalorder %s1423_s19, %s1417_s10 }
  0x1d   : > { %v774_v30 = vld [vmem:[%s1950_s5 + $0x20] sm:$0xff]  ;;  %v776_v32 = vld [vmem:[%s1950_s5 + $0x30] sm:$0xff]  ;;  %v1404_v33 = vld [vmem:[%s1947_s2 + $0x28] sm:$0xff]  }
  0x1e   : > { %v777_v34 = vld [vmem:[%s1950_s5 + $0x38] sm:$0xff]  ;;  %v778_v35 = vld [vmem:[%s1950_s5 + $0x40] sm:$0xff]  ;;  %v779_v36 = vld [vmem:[%s1950_s5 + $0x48] sm:$0xff]  ;;  %p1419_p13 = pnand %p1418_p12, %p1577_p4  ;;  %p1426_p3 = por %p1425_p2, %p1424_p1 }
  0x1f   : > { %1314 = vmatmul.mubr.msk.bf16.vlgmr.msra.gmra.mxu1 %vm513_vm1, %v1399_v8  ;;  %440 = vperm.xlu0 %1395, %v382_v10   ;;  %v780_v37 = vld [vmem:[%s1950_s5 + $0x50] sm:$0xff]  ;;  %v781_v39 = vld [vmem:[%s1950_s5 + $0x58] sm:$0xff]  ;;  %v782_v40 = vld [vmem:[%s1950_s5 + $0x60] sm:$0xff] }
  0x20   : > { %587 = vmatprep.mubr.bf16.mxu1 %v1495_v0  ;;  %445 = vperm.xlu1 %1396, %v383_v11   ;;  %v1405_v38 = vld [vmem:[%s1947_s2 + $0x30] sm:$0xff]   ;;  %v783_v41 = vld [vmem:[%s1950_s5 + $0x68] sm:$0xff]  ;;  %v1406_v43 = vld [vmem:[%s1947_s2 + $0x38] sm:$0xff]   ;;  %p1420_p0 = pneg %p1419_p13 }
  0x21   : > { %v784_v42 = vld [vmem:[%s1950_s5 + $0x70] sm:$0xff]  ;;  %v785_v44 = vld [vmem:[%s1950_s5 + $0x78] sm:$0xff] }
  0x22   : > { %p1427_p5 = pnand %p1426_p3, %p1420_p0 }
  0x23   : > { %430 = vperm.xlu0 %1395, %v380_v12  }
  0x24   : > { %435 = vperm.xlu1 %1396, %v381_v14  }
  0x27   : > { %1315 = vmatmul.mubr.msk.bf16.gmra.mxu1 %vm513_vm1, %v1400_v13  ;;  %420 = vperm.xlu0 %1395, %v378_v15  }
  0x28   : > { %597 = vmatprep.mubr.bf16.mxu1 %v1495_v0  ;;  %425 = vperm.xlu1 %1396, %v379_v16  }
  0x2b   : > { %410 = vperm.xlu0 %1395, %v376_v17  }
  0x2c   : > { %415 = vperm.xlu1 %1396, %v377_v19  }
  0x2f   : > { %1316 = vmatmul.mubr.msk.bf16.gmra.mxu1 %vm513_vm1, %v1401_v18  ;;  %400 = vperm.xlu0 %1395, %v374_v20  }
  0x30   : > { %607 = vmatprep.mubr.bf16.mxu1 %v1495_v0  ;;  %405 = vperm.xlu1 %1396, %v375_v21  }
  0x33   : > { %390 = vperm.xlu0 %1395, %v372_v22  }
  0x34   : > { %395 = vperm.xlu1 %1396, %v373_v24  }
  0x37   : > { %1317 = vmatmul.mubr.msk.bf16.gmra.mxu1 %vm513_vm1, %v1402_v23  ;;  %788 = vperm.xlu0 %1395, %v770_v25  }
  0x38   : > { %617 = vmatprep.mubr.bf16.mxu1 %v1495_v0  ;;  %793 = vperm.xlu1 %1396, %v771_v26  }
  0x3b   : > { %798 = vperm.xlu0 %1395, %v772_v27  }
  0x3c   : > { %803 = vperm.xlu1 %1396, %v773_v29  }
  0x3f   : > { %1318 = vmatmul.mubr.msk.bf16.gmra.mxu1 %vm513_vm1, %v1403_v28  ;;  %808 = vperm.xlu0 %1395, %v774_v30  }
  0x40   : > { %627 = vmatprep.mubr.bf16.mxu1 %v1495_v0  ;;  %813 = vperm.xlu1 %1396, %v775_v31  }
  0x43   : > { %818 = vperm.xlu0 %1395, %v776_v32  }
  0x44   : > { %823 = vperm.xlu1 %1396, %v777_v34  }
  0x47   : > { %1319 = vmatmul.mubr.msk.bf16.gmra.mxu1 %vm513_vm1, %v1404_v33  ;;  %828 = vperm.xlu0 %1395, %v778_v35   ;;  %v1792_v33 = vld [vmem:[%s347_s8] sm:$0xff]  ;;  %s1170_s8 = scalar_lea.hbm %s1951_s6, %s1333_s22 }
  0x48   : > { %637 = vmatprep.mubr.bf16.mxu1 %v1495_v0  ;;  %833 = vperm.xlu1 %1396, %v779_v36   ;;  %v1323_v35 = vcombine.high %v1792_v33, %v1792_v33 }
  0x4b   : > { %838 = vperm.xlu0 %1395, %v780_v37  }
  0x4c   : > { %843 = vperm.xlu1 %1396, %v781_v39  }
  0x4f   : > { %1320 = vmatmul.mubr.msk.bf16.gmra.mxu1 %vm513_vm1, %v1405_v38  ;;  %848 = vperm.xlu0 %1395, %v782_v40  }
  0x50   : > { %647 = vmatprep.mubr.bf16.mxu1 %v1495_v0  ;;  %853 = vperm.xlu1 %1396, %v783_v41  }
  0x53   : > { %858 = vperm.xlu0 %1395, %v784_v42  }
  0x54   : > { %863 = vperm.xlu1 %1396, %v785_v44  }
  0x57   : > { %1321 = vmatmul.mubr.msk.bf16.gmra.mxu1 %vm513_vm1, %v1406_v43 }
  0x58   : > { %746 = vmatprep.mubr.bf16.mxu1 %v1323_v35 }
  0x92   : > { %v1741_v45 = vpop.permute.xlu0 %460  ;;  %v1743_v46 = vpop.permute.xlu1 %450 }
  0x96   : > { %v1745_v47 = vpop.permute.xlu0 %465 }
  0x97   : > { %v1747_v48 = vpop.permute.xlu1 %455 }
  0x9a   : > { %v1749_v49 = vpop.permute.xlu0 %440 }
  0x9b   : > { %v1751_v50 = vpop.permute.xlu1 %445 }
  0x9e   : > { %v1753_v51 = vpop.permute.xlu0 %430 }
  0x9f   : > { %v1755_v52 = vpop.permute.xlu1 %435 }
  0xa2   : > { %v1757_v53 = vpop.permute.xlu0 %420 }
  0xa3   : > { %v1759_v54 = vpop.permute.xlu1 %425 }
  0xa6   : > { %v1761_v55 = vpop.permute.xlu0 %410 }
  0xa7   : > { %v1763_v56 = vpop.permute.xlu1 %415 }
  0xaa   : > { %v401_v57 = vpop.permute.xlu0 %400 }
  0xab   : > { %v406_v58 = vpop.permute.xlu1 %405 }
  0xae   : > { %v391_v59 = vpop.permute.xlu0 %390 }
  0xaf   : > { %v396_v62 = vpop.permute.xlu1 %395 }
  0xdf   : > { %v579_v60 = vpop.f32.mrf.mxu1 }
  0xe0   : > { %v580_v63 = vadd.f32 %v579_v60, %v391_v59 }
  0xe1   : > { %v581_v61 = vpop.f32.mrf.mxu1 }
  0xe2   : > { %v582_v2 = vadd.f32 %v581_v61, %v391_v59  ;;  %v658_v5 = vmax.f32 %v580_v63, 0.0 }
  0xe3   : > { %v583_v1 = vpop.f32.mrf.mxu1 }
  0xe4   : > { %v584_v3 = vadd.f32 %v583_v1, %v396_v62  ;;  %v659_v9 = vmax.f32 %v582_v2, 0.0 }
  0xe5   : > { %v585_v4 = vpop.f32.mrf.mxu1 }
  0xe6   : > { %v660_v6 = vmax.f32 %v584_v3, 0.0  ;;  %v586_v7 = vadd.f32 %v585_v4, %v396_v62 }
  0xe7   : > { %v589_v8 = vpop.f32.mrf.mxu1 }
  0xe8   : > { %v1765_v10 = vpack.c.bf16 %v660_v6, %v658_v5  ;;  %v661_v11 = vmax.f32 %v586_v7, 0.0  ;;  %v590_v14 = vadd.f32 %v589_v8, %v401_v57 }
  0xe9   : > { %v591_v12 = vpop.f32.mrf.mxu1 }
  0xea   : > { %v1767_v13 = vpack.c.bf16 %v661_v11, %v659_v9  ;;  %v592_v16 = vadd.f32 %v591_v12, %v401_v57  ;;  %v662_v19 = vmax.f32 %v590_v14, 0.0 }
  0xeb   : > { %v593_v15 = vpop.f32.mrf.mxu1 }
  0xec   : > { %v594_v17 = vadd.f32 %v593_v15, %v406_v58  ;;  %v663_v23 = vmax.f32 %v592_v16, 0.0 }
  0xed   : > { %v595_v18 = vpop.f32.mrf.mxu1 }
  0xee   : > { %v664_v20 = vmax.f32 %v594_v17, 0.0  ;;  %v596_v21 = vadd.f32 %v595_v18, %v406_v58 }
  0xef   : > { %v1769_v22 = vpop.f32.mrf.mxu1 }
  0xf0   : > { %v1771_v24 = vpack.c.bf16 %v664_v20, %v662_v19  ;;  %v665_v25 = vmax.f32 %v596_v21, 0.0 }
  0xf1   : > { %v1773_v26 = vpop.f32.mrf.mxu1 }
  0xf2   : > { %v1775_v27 = vpack.c.bf16 %v665_v25, %v663_v23 }
  0xf3   : > { %v1777_v28 = vpop.f32.mrf.mxu1 }
  0xf5   : > { %v1779_v29 = vpop.f32.mrf.mxu1 }
  0xf7   : > { %v1781_v30 = vpop.f32.mrf.mxu1 }
  0xf9   : > { %v1788_v31 = vpop.f32.mrf.mxu1 }
  0xfb   : > { %v1790_v32 = vpop.f32.mrf.mxu1 }
  0xfd   : > { %v615_v34 = vpop.f32.mrf.mxu1 }
  0xff   : > { %v619_v36 = vpop.f32.mrf.mxu1 }
 0x101   : > { %v621_v37 = vpop.f32.mrf.mxu1 }
 0x103   : > { %v623_v38 = vpop.f32.mrf.mxu1 }
 0x105   : > { %v625_v39 = vpop.f32.mrf.mxu1 }
 0x107   : > { %v629_v40 = vpop.f32.mrf.mxu1 }
 0x108   : > { %v630_v25 = vadd.f32 %v629_v40, %v1749_v49 }
 0x109   : > { %v631_v41 = vpop.f32.mrf.mxu1 }
 0x10a   : > { %v632_v17 = vadd.f32 %v631_v41, %v1749_v49  ;;  %v612_v49 = vadd.f32 %v1788_v31, %v1757_v53  ;;  %v602_v31 = vadd.f32 %v1773_v26, %v1761_v55 }
 0x10b   : > { %v633_v42 = vpop.f32.mrf.mxu1 }
 0x10c   : > { %v634_v19 = vadd.f32 %v633_v42, %v1751_v50  ;;  %v679_v41 = vmax.f32 %v632_v17, 0.0 }
 0x10d   : > { %v635_v43 = vpop.f32.mrf.mxu1 }
 0x10e   : > { %v636_v9 = vadd.f32 %v635_v43, %v1751_v50  ;;  %v624_v50 = vadd.f32 %v623_v38, %v1755_v52  ;;  %v680_v42 = vmax.f32 %v634_v19, 0.0  ;;  %v606_v38 = vadd.f32 %v1779_v29, %v1763_v56 }
 0x10f   : > { %v639_v44 = vpop.f32.mrf.mxu1 }
 0x110   : > { %v640_v15 = vadd.f32 %v639_v44, %v1743_v46  ;;  %v669_v29 = vmax.f32 %v606_v38, 0.0 }
 0x111   : > { %v641_v57 = vpop.f32.mrf.mxu1 }
 0x112   : > { %v642_v5 = vadd.f32 %v641_v57, %v1743_v46  ;;  %v682_v35 = vmax.f32 %v640_v15, 0.0  ;;  %v622_v46 = vadd.f32 %v621_v37, %v1753_v51  ;;  %v614_v37 = vadd.f32 %v1790_v32, %v1759_v54 }
 0x113   : > { %v643_v58 = vpop.f32.mrf.mxu1 }
 0x114   : > { %v644_v7 = vadd.f32 %v643_v58, %v1747_v48  ;;  %v683_v18 = vmax.f32 %v642_v5, 0.0  ;;  %v620_v58 = vadd.f32 %v619_v36, %v1753_v51  ;;  %v675_v40 = vmax.f32 %v622_v46, 0.0 }
 0x115   : > { %v645_v59 = vpop.f32.mrf.mxu1  ;;  %v610_v51 = vadd.f32 %v1781_v30, %v1757_v53  ;;  %v672_v32 = vmax.f32 %v614_v37, 0.0  ;;  %v667_v30 = vmax.f32 %v602_v31, 0.0 }
 0x116   : > { %v646_v63 = vadd.f32 %v645_v59, %v1747_v48  ;;  %v684_v20 = vmax.f32 %v644_v7, 0.0  ;;  %v681_v48 = vmax.f32 %v636_v9, 0.0  ;;  %v678_v59 = vmax.f32 %v630_v25, 0.0 }
 0x117   : > { %v649_v60 = vpop.f32.mrf.mxu1  ;;  %v674_v36 = vmax.f32 %v620_v58, 0.0  ;;  %v670_v53 = vmax.f32 %v610_v51, 0.0  ;;  %v695_v26 = vpack.c.bf16 %v669_v29, %v667_v30 }
 0x118   : > { %v650_v3 = vadd.f32 %v649_v60, %v1741_v45  ;;  %v685_v11 = vmax.f32 %v646_v63, 0.0  ;;  %v702_v43 = vpack.c.bf16 %v684_v20, %v682_v35  ;;  %v701_v57 = vpack.c.bf16 %v681_v48, %v679_v41 }
 0x119   : > { %v651_v61 = vpop.f32.mrf.mxu1  ;;  %v676_v60 = vmax.f32 %v624_v50, 0.0 }
 0x11a   : > { %v652_v1 = vadd.f32 %v651_v61, %v1741_v45  ;;  %v686_v16 = vmax.f32 %v650_v3, 0.0  ;;  %v703_v23 = vpack.c.bf16 %v685_v11, %v683_v18 }
 0x11b   : > { %v653_v62 = vpop.f32.mrf.mxu1  ;;  %v698_v63 = vpack.c.bf16 %v676_v60, %v674_v36 }
 0x11c   : > { %v654_v2 = vadd.f32 %v653_v62, %v1745_v47  ;;  %v687_v12 = vmax.f32 %v652_v1, 0.0  ;;  %v671_v62 = vmax.f32 %v612_v49, 0.0 }
 0x11d   : > { %v655_v4 = vpop.f32.mrf.mxu1 }
 0x11e   : > { %v656_v6 = vadd.f32 %v655_v4, %v1745_v47  ;;  %v688_v8 = vmax.f32 %v654_v2, 0.0  ;;  %v626_v47 = vadd.f32 %v625_v39, %v1755_v52  ;;  %v616_v39 = vadd.f32 %v615_v34, %v1759_v54 }
 0x11f   : > { %v700_v52 = vpack.c.bf16 %v680_v42, %v678_v59  ;;  %v604_v54 = vadd.f32 %v1777_v28, %v1763_v56  ;;  %v600_v2 = vadd.f32 %v1769_v22, %v1761_v55  ;;  %v696_v4 = vpack.c.bf16 %v672_v32, %v670_v53  ;;  %v1407_v55 = vld [vmem:[%s1949_s4] sm:$0xff]   ;;  %v1408_v22 = vld [vmem:[%s1949_s4 + $0x8] sm:$0xff]   ;;  %v1409_v28 = vld [vmem:[%s1949_s4 + $0x10] sm:$0xff]  }
 0x120   : > { %v689_v14 = vmax.f32 %v656_v6, 0.0  ;;  %v704_v21 = vpack.c.bf16 %v688_v8, %v686_v16  ;;  %v677_v44 = vmax.f32 %v626_v47, 0.0  ;;  %v673_v34 = vmax.f32 %v616_v39, 0.0  ;;  %v1410_v6 = vld [vmem:[%s1949_s4 + $0x18] sm:$0xff]   ;;  %v789_v8 = vpop.permute.xlu0 %788  ;;  %v794_v16 = vpop.permute.xlu1 %793 }
 0x121   : > { %v668_v3 = vmax.f32 %v604_v54, 0.0  ;;  %v666_v5 = vmax.f32 %v600_v2, 0.0 }
 0x122   : > { %v705_v45 = vpack.c.bf16 %v689_v14, %v687_v12  ;;  %v699_v61 = vpack.c.bf16 %v677_v44, %v675_v40  ;;  %v697_v1 = vpack.c.bf16 %v673_v34, %v671_v62 }
 0x123   : > { %v694_v56 = vpack.c.bf16 %v668_v3, %v666_v5 }
 0x124   : > { %714 = vmatprep.subr.bf16.mxu1 %v705_v45  ;;  %914 = vmatprep.subr.bf16.mxu0 %v705_v45  ;;  %v804_v35 = vpop.permute.xlu1 %803 }
 0x125   : > { %715 = vmatpush1.bf16.xpose.msra.mxu1 %v704_v21  ;;  %915 = vmatpush1.bf16.msra.mxu0 %v704_v21 }
 0x126   : > { %716 = vmatprep.subr.bf16.mxu1 %v703_v23  ;;  %916 = vmatprep.subr.bf16.mxu0 %v703_v23 }
 0x128   : > { %v814_v40 = vpop.permute.xlu1 %813 }
 0x129   : > { %917 = vmatpush1.bf16.msra.mxu0 %v702_v43 }
 0x12a   : > { %918 = vmatprep.subr.bf16.mxu0 %v701_v57 }
 0x12c   : > { %v824_v32 = vpop.permute.xlu1 %823 }
 0x12d   : > { %717 = vmatpush1.bf16.xpose.msra.mxu1 %v702_v43  ;;  %919 = vmatpush1.bf16.msra.mxu0 %v700_v52 }
 0x12e   : > { %718 = vmatprep.subr.bf16.mxu1 %v701_v57  ;;  %920 = vmatprep.subr.bf16.mxu0 %v699_v61 }
 0x131   : > { %921 = vmatpush1.bf16.msra.mxu0 %v698_v63 }
 0x132   : > { %922 = vmatprep.subr.bf16.mxu0 %v697_v1 }
 0x135   : > { %719 = vmatpush1.bf16.xpose.msra.mxu1 %v700_v52  ;;  %923 = vmatpush1.bf16.msra.mxu0 %v696_v4 }
 0x136   : > { %720 = vmatprep.subr.bf16.mxu1 %v699_v61  ;;  %924 = vmatprep.subr.bf16.mxu0 %v695_v26 }
 0x139   : > { %925 = vmatpush1.bf16.msra.mxu0 %v694_v56 }
 0x13a   : > { %926 = vmatprep.subr.bf16.mxu0 %v1775_v27 }
 0x13d   : > { %721 = vmatpush1.bf16.xpose.msra.mxu1 %v698_v63  ;;  %927 = vmatpush1.bf16.msra.mxu0 %v1771_v24 }
 0x13e   : > { %722 = vmatprep.subr.bf16.mxu1 %v697_v1  ;;  %928 = vmatprep.subr.bf16.mxu0 %v1767_v13 }
 0x141   : > { %929 = vmatpush1.bf16.msra.mxu0 %v1765_v10 }
 0x144   : > { %947 = vmatmul.mubr.bf16.vlgmr.msra.gmra.mxu0 %v1407_v55  ;;  %v834_v55 = vpop.permute.xlu1 %833 }
 0x145   : > { %723 = vmatpush1.bf16.xpose.msra.mxu1 %v696_v4  ;;  %956 = vmatprep.mubr.bf16.mxu0 %v1495_v0 }
 0x146   : > { %724 = vmatprep.subr.bf16.mxu1 %v695_v26 }
 0x14c   : > { %957 = vmatmul.mubr.bf16.gmra.mxu0 %v1408_v22 }
 0x14d   : > { %725 = vmatpush1.bf16.xpose.msra.mxu1 %v694_v56  ;;  %966 = vmatprep.mubr.bf16.mxu0 %v1495_v0 }
 0x14e   : > { %726 = vmatprep.subr.bf16.mxu1 %v1775_v27  ;;  %v1411_v27 = vld [vmem:[%s1949_s4 + $0x20] sm:$0xff]  }
 0x154   : > { %967 = vmatmul.mubr.bf16.gmra.mxu0 %v1409_v28 }
 0x155   : > { %727 = vmatpush1.bf16.xpose.msra.mxu1 %v1771_v24  ;;  %976 = vmatprep.mubr.bf16.mxu0 %v1495_v0  ;;  %v1322_v24 = vcombine.low %v1792_v33, %v1792_v33  ;;  %v1414_v33 = vld [vmem:[%s1949_s4 + $0x38] sm:$0xff]  }
 0x156   : > { %728 = vmatprep.subr.bf16.mxu1 %v1767_v13  ;;  %v1412_v13 = vld [vmem:[%s1949_s4 + $0x28] sm:$0xff]  }
 0x15c   : > { %977 = vmatmul.mubr.bf16.gmra.mxu0 %v1410_v6 }
 0x15d   : > { %729 = vmatpush1.bf16.xpose.msra.mxu1 %v1765_v10  ;;  %986 = vmatprep.mubr.bf16.mxu0 %v1495_v0  ;;  %v1413_v10 = vld [vmem:[%s1949_s4 + $0x30] sm:$0xff]  }
 0x164   : > { %987 = vmatmul.mubr.bf16.gmra.mxu0 %v1411_v27  ;;  %747 = vmatmul.mubr.bf16.vlgmr.msra.gmra.mxu1 %v1322_v24 }
 0x165   : > { %996 = vmatprep.mubr.bf16.mxu0 %v1495_v0 }
 0x16c   : > { %997 = vmatmul.mubr.bf16.gmra.mxu0 %v1412_v13 }
 0x16d   : > { %1006 = vmatprep.mubr.bf16.mxu0 %v1495_v0 }
 0x174   : > { %1007 = vmatmul.mubr.bf16.gmra.mxu0 %v1413_v10 }
 0x175   : > { %1016 = vmatprep.mubr.bf16.mxu0 %v1495_v0  ;;  %v799_v0 = vpop.permute.xlu0 %798 }
 0x179   : > { %v809_v39 = vpop.permute.xlu0 %808 }
 0x17c   : > { %1017 = vmatmul.mubr.bf16.gmra.mxu0 %v1414_v33 }
 0x17d   : > { %v819_v61 = vpop.permute.xlu0 %818 }
 0x181   : > { %v829_v30 = vpop.permute.xlu0 %828 }
 0x185   : > { %v839_v13 = vpop.permute.xlu0 %838 }
 0x204   : > { %v948_v7 = vpop.f32.mrf.mxu0 }
 0x205   : > { %v949_v11 = vadd.f32 %v948_v7, %v789_v8 }
 0x206   : > { %v950_v9 = vpop.f32.mrf.mxu0 }
 0x207   : > { %v951_v12 = vadd.f32 %v950_v9, %v789_v8 }
 0x208   : > { %v952_v14 = vpop.f32.mrf.mxu0 }
 0x209   : > { %v1027_v15 = vmax.f32 %v949_v11, %v951_v12  ;;  %v953_v18 = vadd.f32 %v952_v14, %v794_v16  ;;  %v844_v11 = vpop.permute.xlu1 %843 }
 0x20a   : > { %v954_v17 = vpop.f32.mrf.mxu0 }
 0x20b   : > { %v955_v45 = vadd.f32 %v954_v17, %v794_v16  ;;  %1028 = vmax.xlane.f32.xlu0 %v1027_v15 }
 0x20c   : > { %v958_v19 = vpop.f32.mrf.mxu0 }
 0x20d   : > { %v1030_v20 = vmax.f32 %v953_v18, %v955_v45  ;;  %v959_v47 = vadd.f32 %v958_v19, %v799_v0  ;;  %v849_v18 = vpop.permute.xlu0 %848 }
 0x20e   : > { %v960_v21 = vpop.f32.mrf.mxu0 }
 0x20f   : > { %v961_v48 = vadd.f32 %v960_v21, %v799_v0  ;;  %1031 = vmax.xlane.f32.xlu1 %v1030_v20 }
 0x210   : > { %v962_v23 = vpop.f32.mrf.mxu0 }
 0x211   : > { %v1033_v25 = vmax.f32 %v959_v47, %v961_v48  ;;  %v963_v41 = vadd.f32 %v962_v23, %v804_v35  ;;  %v854_v47 = vpop.permute.xlu1 %853 }
 0x212   : > { %v964_v46 = vpop.f32.mrf.mxu0 }
 0x213   : > { %v965_v50 = vadd.f32 %v964_v46, %v804_v35  ;;  %1034 = vmax.xlane.f32.xlu0 %v1033_v25 }
 0x214   : > { %v968_v42 = vpop.f32.mrf.mxu0 }
 0x215   : > { %v1036_v43 = vmax.f32 %v963_v41, %v965_v50  ;;  %v969_v57 = vadd.f32 %v968_v42, %v809_v39  ;;  %v859_v41 = vpop.permute.xlu0 %858 }
 0x216   : > { %v970_v44 = vpop.f32.mrf.mxu0 }
 0x217   : > { %v971_v58 = vadd.f32 %v970_v44, %v809_v39  ;;  %1037 = vmax.xlane.f32.xlu0 %v1036_v43 }
 0x218   : > { %v972_v59 = vpop.f32.mrf.mxu0 }
 0x219   : > { %v1039_v49 = vmax.f32 %v969_v57, %v971_v58  ;;  %v973_v60 = vadd.f32 %v972_v59, %v814_v40  ;;  %v864_v57 = vpop.permute.xlu1 %863 }
 0x21a   : > { %v974_v37 = vpop.f32.mrf.mxu0 }
 0x21b   : > { %v975_v52 = vadd.f32 %v974_v37, %v814_v40  ;;  %1040 = vmax.xlane.f32.xlu1 %v1039_v49 }
 0x21c   : > { %v978_v38 = vpop.f32.mrf.mxu0 }
 0x21d   : > { %v1042_v34 = vmax.f32 %v973_v60, %v975_v52  ;;  %v979_v36 = vadd.f32 %v978_v38, %v819_v61 }
 0x21e   : > { %v980_v51 = vpop.f32.mrf.mxu0 }
 0x21f   : > { %v981_v31 = vadd.f32 %v980_v51, %v819_v61  ;;  %1043 = vmax.xlane.f32.xlu0 %v1042_v34 }
 0x220   : > { %v982_v62 = vpop.f32.mrf.mxu0 }
 0x221   : > { %v1045_v54 = vmax.f32 %v979_v36, %v981_v31  ;;  %v983_v29 = vadd.f32 %v982_v62, %v824_v32 }
 0x222   : > { %v984_v63 = vpop.f32.mrf.mxu0 }
 0x223   : > { %v985_v1 = vadd.f32 %v984_v63, %v824_v32  ;;  %1046 = vmax.xlane.f32.xlu1 %v1045_v54 }
 0x224   : > { %v988_v2 = vpop.f32.mrf.mxu0  ;;  %v748_v37 = vpop.f32.mrf.mxu1 }
 0x225   : > { %v1048_v53 = vmax.f32 %v983_v29, %v985_v1  ;;  %v989_v4 = vadd.f32 %v988_v2, %v829_v30  ;;  %1079 = vst [vmem:[%s321_s20] sm:$0xff] %v748_v37 }
 0x226   : > { %v990_v3 = vpop.f32.mrf.mxu0  ;;  %v750_v60 = vpop.f32.mrf.mxu1 }
 0x227   : > { %v991_v26 = vadd.f32 %v990_v3, %v829_v30  ;;  %1049 = vmax.xlane.f32.xlu0 %v1048_v53 }
 0x228   : > { %v992_v5 = vpop.f32.mrf.mxu0  ;;  %v751_v52 = vpop.f32.mrf.mxu1 }
 0x229   : > { %v1051_v56 = vmax.f32 %v989_v4, %v991_v26  ;;  %v993_v28 = vadd.f32 %v992_v5, %v834_v55 }
 0x22a   : > { %v994_v22 = vpop.f32.mrf.mxu0  ;;  %v752_v38 = vpop.f32.mrf.mxu1 }
 0x22b   : > { %v995_v6 = vadd.f32 %v994_v22, %v834_v55  ;;  %1052 = vmax.xlane.f32.xlu1 %v1051_v56 }
 0x22c   : > { %v998_v27 = vpop.f32.mrf.mxu0 }
 0x22d   : > { %v1054_v24 = vmax.f32 %v993_v28, %v995_v6  ;;  %v999_v33 = vadd.f32 %v998_v27, %v839_v13 }
 0x22e   : > { %v1000_v10 = vpop.f32.mrf.mxu0 }
 0x22f   : > { %v1001_v7 = vadd.f32 %v1000_v10, %v839_v13  ;;  %1055 = vmax.xlane.f32.xlu0 %v1054_v24 }
 0x230   : > { %v1002_v8 = vpop.f32.mrf.mxu0 }
 0x231   : > { %v1057_v9 = vmax.f32 %v999_v33, %v1001_v7  ;;  %v1003_v14 = vadd.f32 %v1002_v8, %v844_v11 }
 0x232   : > { %v1004_v12 = vpop.f32.mrf.mxu0 }
 0x233   : > { %v1005_v15 = vadd.f32 %v1004_v12, %v844_v11  ;;  %1058 = vmax.xlane.f32.xlu1 %v1057_v9 }
 0x234   : > { %v1008_v16 = vpop.f32.mrf.mxu0 }
 0x235   : > { %v1060_v17 = vmax.f32 %v1003_v14, %v1005_v15  ;;  %v1009_v19 = vadd.f32 %v1008_v16, %v849_v18 }
 0x236   : > { %v1010_v45 = vpop.f32.mrf.mxu0 }
 0x237   : > { %v1011_v20 = vadd.f32 %v1010_v45, %v849_v18  ;;  %1061 = vmax.xlane.f32.xlu0 %v1060_v17 }
 0x238   : > { %v1012_v0 = vpop.f32.mrf.mxu0 }
 0x239   : > { %v1063_v21 = vmax.f32 %v1009_v19, %v1011_v20  ;;  %v1013_v23 = vadd.f32 %v1012_v0, %v854_v47 }
 0x23a   : > { %v1014_v48 = vpop.f32.mrf.mxu0 }
 0x23b   : > { %v1015_v25 = vadd.f32 %v1014_v48, %v854_v47  ;;  %1064 = vmax.xlane.f32.xlu1 %v1063_v21 }
 0x23c   : > { %v1018_v35 = vpop.f32.mrf.mxu0 }
 0x23d   : > { %v1066_v46 = vmax.f32 %v1013_v23, %v1015_v25  ;;  %v1019_v42 = vadd.f32 %v1018_v35, %v859_v41 }
 0x23e   : > { %v1020_v50 = vpop.f32.mrf.mxu0 }
 0x23f   : > { %v1021_v43 = vadd.f32 %v1020_v50, %v859_v41  ;;  %1067 = vmax.xlane.f32.xlu0 %v1066_v46 }
 0x240   : > { %v1022_v39 = vpop.f32.mrf.mxu0 }
 0x241   : > { %v1069_v44 = vmax.f32 %v1019_v42, %v1021_v43  ;;  %v1023_v59 = vadd.f32 %v1022_v39, %v864_v57 }
 0x242   : > { %v1024_v58 = vpop.f32.mrf.mxu0 }
 0x243   : > { %v1025_v49 = vadd.f32 %v1024_v58, %v864_v57  ;;  %1070 = vmax.xlane.f32.xlu1 %v1069_v44 }
 0x245   : > { %v1072_v40 = vmax.f32 %v1023_v59, %v1025_v49 }
 0x247   : > { %1073 = vmax.xlane.f32.xlu0 %v1072_v40 }
 0x248   : > { %1430 = shalt.err (!%p1427_p5)
}
 0x249   : > { %s1431_s27 = scalar_lea.hbm %s1170_s8, 128  ;;  %s1435_s22 = scalar_lea.hbm %s1951_s6, 256 }
 0x24a   : > { %p1432_p6 = scmp.ne.s32.totalorder %s1170_s8, %s1431_s27  ;;  %p1436_p10 = scmp.lt.s32.totalorder %s1170_s8, %s1951_s6 }
 0x24b   : > { %p1437_p11 = scmp.lt.s32.totalorder %s1435_s22, %s1431_s27 }
 0x24c   : > { %p1433_p7 = pnand %p1432_p6, %p1577_p4 }
 0x24d   : > { %p1438_p12 = por %p1437_p11, %p1436_p10 }
 0x24e   : > { %p1434_p9 = pneg %p1433_p7 }
 0x250   : > { %p1439_p13 = pnand %p1438_p12, %p1434_p9 }
 0x252   : > { %1442 = shalt.err (!%p1439_p13)
}
 0x253   : > { %1339 = dma.vmem_to_hbm [thread:$0]  (%p1577_p4), %s1173_s21, 128, %s1170_s8, %s1154_s16   ;;  %vm1080_vm2 = vcmask 7168  }
 0x254   : > { %s1338_s10 = sshll.u32 %s1596_s15, 7 }
 0x255   : > { %s1889_s19 = scalar_lea.vmem %s1952_s7, %s1338_s10 }
 0x294   : > { %v1029_v34 = vpop.xlane.xlu0 %1028 }
 0x295   : > { %1081 = vst.msk [vmem:[%s1889_s19] sm:$0xff] %vm1080_vm2, %v1029_v34 }
 0x298   : > { %v1032_v61 = vpop.xlane.xlu1 %1031 }
 0x299   : > { %1082 = vst.msk [vmem:[%s1889_s19 + $0x8] sm:$0xff] %vm1080_vm2, %v1032_v61 }
 0x29c   : > { %v1035_v51 = vpop.xlane.xlu0 %1034 }
 0x29d   : > { %1083 = vst.msk [vmem:[%s1889_s19 + $0x10] sm:$0xff] %vm1080_vm2, %v1035_v51 }
 0x2a0   : > { %v1038_v36 = vpop.xlane.xlu0 %1037 }
 0x2a1   : > { %1084 = vst.msk [vmem:[%s1889_s19 + $0x18] sm:$0xff] %vm1080_vm2, %v1038_v36 }
 0x2a4   : > { %v1041_v31 = vpop.xlane.xlu1 %1040 }
 0x2a5   : > { %1085 = vst.msk [vmem:[%s1889_s19 + $0x20] sm:$0xff] %vm1080_vm2, %v1041_v31 }
 0x2a8   : > { %v1044_v62 = vpop.xlane.xlu0 %1043 }
 0x2a9   : > { %1086 = vst.msk [vmem:[%s1889_s19 + $0x28] sm:$0xff] %vm1080_vm2, %v1044_v62 }
 0x2ac   : > { %v1047_v54 = vpop.xlane.xlu1 %1046 }
 0x2ad   : > { %1087 = vst.msk [vmem:[%s1889_s19 + $0x30] sm:$0xff] %vm1080_vm2, %v1047_v54 }
 0x2b0   : > { %v1050_v32 = vpop.xlane.xlu0 %1049 }
 0x2b1   : > { %1088 = vst.msk [vmem:[%s1889_s19 + $0x38] sm:$0xff] %vm1080_vm2, %v1050_v32 }
 0x2b4   : > { %v1053_v63 = vpop.xlane.xlu1 %1052 }
 0x2b5   : > { %1089 = vst.msk [vmem:[%s1889_s19 + $0x40] sm:$0xff] %vm1080_vm2, %v1053_v63 }
 0x2b8   : > { %v1056_v29 = vpop.xlane.xlu0 %1055 }
 0x2b9   : > { %1090 = vst.msk [vmem:[%s1889_s19 + $0x48] sm:$0xff] %vm1080_vm2, %v1056_v29 }
 0x2bc   : > { %v1059_v1 = vpop.xlane.xlu1 %1058 }
 0x2bd   : > { %1091 = vst.msk [vmem:[%s1889_s19 + $0x50] sm:$0xff] %vm1080_vm2, %v1059_v1 }
 0x2c0   : > { %v1062_v2 = vpop.xlane.xlu0 %1061 }
 0x2c1   : > { %1092 = vst.msk [vmem:[%s1889_s19 + $0x58] sm:$0xff] %vm1080_vm2, %v1062_v2 }
 0x2c4   : > { %v1065_v53 = vpop.xlane.xlu1 %1064 }
 0x2c5   : > { %1093 = vst.msk [vmem:[%s1889_s19 + $0x60] sm:$0xff] %vm1080_vm2, %v1065_v53 }
 0x2c8   : > { %v1068_v30 = vpop.xlane.xlu0 %1067 }
 0x2c9   : > { %1094 = vst.msk [vmem:[%s1889_s19 + $0x68] sm:$0xff] %vm1080_vm2, %v1068_v30 }
 0x2cc   : > { %v1071_v3 = vpop.xlane.xlu1 %1070 }
 0x2cd   : > { %1095 = vst.msk [vmem:[%s1889_s19 + $0x70] sm:$0xff] %vm1080_vm2, %v1071_v3 }
 0x2d0   : > { %v1074_v4 = vpop.xlane.xlu0 %1073 }
 0x2d1   : > { %1096 = vst.msk [vmem:[%s1889_s19 + $0x78] sm:$0xff] %vm1080_vm2, %v1074_v4 }
 0x2d2 PF: > { %p1345_p4 = scmp.ge.s32.totalorder %s1493_s29, 2  ;;  %s1187_s11 = sand.u32 1, %s1473_s24  }
 0x2d3   : > { %s1188_s15 = scalar_lea.sflag [#allocation3], %s1187_s11 }
 0x2d4   : > { %p1342_p0 = pnand %p1345_p4, %p1584_p8 }
 0x2d6   : > { %p1343_p1 = pneg %p1342_p0 }
 0x2d8   : > { %1468 = dma.done.wait (%p1343_p1), %s1188_s15, 128  }
 0x2d9   : > { %1470 = vsyncadd (%p1343_p1), %s1188_s15, 4294967168  ;;  %s21_s29 = sadd.s32 1, %s1493_s29   ;;  %s1955_s24 = smov %s1477_s25 }
 0x2da   : > { %p18_p2 = scmp.ge.s32.totalorder %s21_s29, 4   ;;  %s1956_s25 = smov %s1481_s26 }
 0x2db   : > { %s1957_s26 = smov %s1590_s14  ;;  %s1958_s27 = smov %s1489_s28 }
 0x2dc   : > { %s1959_s28 = smov %s1961_s9  ;;  %20 = sbr.rel (!%p18_p2) target bundleno = 4 (0x4), region = 102 }
 0x2e1   :  { %1201 = vsyncpa [#allocation3], 1 }
 0x2e2   :  { %1203 = vsyncpa [#allocation3 + $0x1], 1 }

</bundles_post_ra>
